<compile_context>
chip_gen: v7x
topology: tpu7x:2x2x1
jax: 0.10.0
libtpu: 0.0.40
codegen_flags: <defaults>
</compile_context>

<pallas_src>
import functools

import jax
import jax.numpy as jnp
from jax import lax
from jax.experimental import pallas as pl
from jax.experimental.pallas import tpu as pltpu

BN_EPS = 1e-5
KK = 5        # conv kernel size
PAD = 2       # conv padding
HALO = 8      # sublane-aligned halo (>= PAD) around conv1's output for conv2's taps


def _round_up(x, m):
    return (x + m - 1) // m * m


def _pick_batch_tile(batch, l_out_p, target_rows=128):
    """Largest divisor of `batch` such that bt * l_out_p stays near target_rows."""
    bt = max(1, min(batch, target_rows // max(l_out_p, 1)))
    while batch % bt:
        bt -= 1
    return bt


# --------------------------------------------------------------------------- #
# Fused residual-block kernel (one grid step = BT batch elements).
# --------------------------------------------------------------------------- #
def _residual_block_kernel(*refs, stride, l_out, l_out_p, bt, has_sc_conv):
    if has_sc_conv:
        (xph_ref, w1_ref, sb1_ref, w2_ref, sb2_ref, ws_ref, sbs_ref,
         o_ref, h1_ref) = refs
    else:
        xph_ref, w1_ref, sb1_ref, w2_ref, sb2_ref, o_ref, h1_ref = refs
        ws_ref = sbs_ref = None

    cin_p = xph_ref.shape[-1]
    cout_p = o_ref.shape[-1]

    # conv1 operand: taps packed into K (KK*cin_p), batch folded into M (bt*l_out_p).
    # Phase split gives unit-stride reads: x_pad[i*s + k] == xph[k % s, i + k // s].
    stacked1 = jnp.concatenate(
        [jnp.concatenate(
            [xph_ref[b, k % stride, pl.ds(k // stride, l_out_p), :]
             for k in range(KK)], axis=1)
         for b in range(bt)], axis=0)                      # (bt*l_out_p, KK*cin_p)

    # ---- conv1 + bn1 + relu: ONE wide-K MXU matmul, f32 accumulation ----
    acc1 = jnp.dot(stacked1, w1_ref[...], preferred_element_type=jnp.float32)
    h1 = jnp.maximum(acc1 * sb1_ref[0:1, :] + sb1_ref[1:2, :], 0.0)
    if l_out != l_out_p:   # rows past the true length must be 0 for conv2's taps
        row = lax.broadcasted_iota(jnp.int32, (bt * l_out_p, 1), 0) % l_out_p
        h1 = jnp.where(row < l_out, h1, 0.0)
    h1 = h1.astype(h1_ref.dtype)

    # ---- stage h1 with zero halos: one full unmasked store per batch element ----
    zeros_halo = jnp.zeros((HALO, cout_p), h1_ref.dtype)
    for b in range(bt):
        h1_ref[b, :, :] = jnp.concatenate(
            [zeros_halo, h1[b * l_out_p:(b + 1) * l_out_p, :], zeros_halo], axis=0)

    # ---- conv2 + bn2: taps K-packed again, zero padding comes from the halos ----
    stacked2 = jnp.concatenate(
        [jnp.concatenate(
            [h1_ref[b, pl.ds(HALO + k - PAD, l_out_p), :] for k in range(KK)],
            axis=1)
         for b in range(bt)], axis=0)                      # (bt*l_out_p, KK*cout_p)
    acc2 = jnp.dot(stacked2, w2_ref[...], preferred_element_type=jnp.float32)
    y = acc2 * sb2_ref[0:1, :] + sb2_ref[1:2, :]

    # ---- shortcut: tap k == PAD of stacked1 is exactly x[:, :, i*stride] ----
    x_sc = stacked1[:, PAD * cin_p:(PAD + 1) * cin_p]      # free lane-aligned slice
    if has_sc_conv:
        sc = jnp.dot(x_sc, ws_ref[...], preferred_element_type=jnp.float32)
        sc = sc * sbs_ref[0:1, :] + sbs_ref[1:2, :]
    else:
        sc = x_sc.astype(jnp.float32)                      # in_c == out_c, stride 1

    # Full-tile, lane/sublane-dense unmasked store (pad rows sliced off in wrapper).
    o_ref[...] = jnp.maximum(y + sc, 0.0).astype(o_ref.dtype)


# --------------------------------------------------------------------------- #
# One-time parameter preparation (hoisted out of the forward path).
# --------------------------------------------------------------------------- #
def prepare_residual_block_params(raw, in_channels, out_channels, stride,
                                  eps=BN_EPS):
    """Fold eval-mode BatchNorm into per-channel scale/shift, reorder conv weights
    to K-packed (tap*Cin, Cout) bf16 and zero-pad channels to 128 lanes (padded
    scale AND shift are zero so padded channels stay exactly zero)."""
    cin_p = _round_up(in_channels, 128)
    cout_p = _round_up(out_channels, 128)

    def prep_w(w, cin_pad):                          # torch layout (Cout, Cin, Kk)
        cout, cin, kk = w.shape
        wm = jnp.transpose(w.astype(jnp.float32), (2, 1, 0))        # (Kk, Cin, Cout)
        wm = jnp.pad(wm, ((0, 0), (0, cin_pad - cin), (0, cout_p - cout)))
        return wm.reshape(kk * cin_pad, cout_p).astype(jnp.bfloat16)  # K-packed taps

    def fold_bn(bn):
        # TODO(synk): BatchNorm is folded in inference mode (running stats);
        # torch-default training mode would use per-batch statistics instead.
        scale = bn['gamma'] / jnp.sqrt(bn['var'] + eps)
        shift = bn['beta'] - bn['mean'] * scale
        sb = jnp.stack([scale, shift]).astype(jnp.float32)   # (2, Cout), kept f32
        return jnp.pad(sb, ((0, 0), (0, cout_p - sb.shape[1])))

    prepped = {'w1': prep_w(raw['w1'], cin_p), 'sb1': fold_bn(raw['bn1']),
               'w2': prep_w(raw['w2'], cout_p), 'sb2': fold_bn(raw['bn2'])}
    if stride != 1 or in_channels != out_channels:
        prepped['ws'] = prep_w(raw['ws'], cin_p)
        prepped['sbs'] = fold_bn(raw['bns'])
    else:
        assert cin_p == cout_p
    return prepped


# --------------------------------------------------------------------------- #
# Forward wrapper: channels-first (torch) in/out, one pallas_call.
# --------------------------------------------------------------------------- #
def residual_block_forward(prepped, x, *, in_channels, out_channels, stride):
    """x: (B, Cin, L) -> (B, Cout, Lout), matching the torch module."""
    B, cin, L = x.shape
    assert cin == in_channels
    cin_p = _round_up(in_channels, 128)
    cout_p = _round_up(out_channels, 128)
    l_out = (L + 2 * PAD - KK) // stride + 1
    l_out_p = _round_up(l_out, 8)
    has_sc_conv = 'ws' in prepped

    bt = _pick_batch_tile(B, l_out_p)          # BT batch elements per grid step
    n_steps = B // bt

    # Minimal per-call glue, all in bf16: channels-last, channel pad to 128 lanes,
    # conv halo pad, and (only if stride > 1) a one-time phase split so every
    # in-kernel read is unit-stride.
    lph = max(-(-(L + 2 * PAD) // stride), l_out_p + (KK - 1) // stride)
    lph_p = _round_up(lph, 8)
    xl = jnp.transpose(x.astype(jnp.bfloat16), (0, 2, 1))             # (B, L, Cin)
    xl = jnp.pad(xl, ((0, 0), (PAD, lph_p * stride - L - PAD), (0, cin_p - cin)))
    if stride == 1:
        xph = xl.reshape(B, 1, lph_p, cin_p)
    else:
        # xph[b, r, i, :] = x_pad[b, i*stride + r, :]
        xph = xl.reshape(B, lph_p, stride, cin_p).transpose(0, 2, 1, 3)

    h1_rows = l_out_p + 2 * HALO

    const = dict(pipeline_mode=pl.Buffered(1))     # constants: single-buffered
    in_specs = [
        pl.BlockSpec((bt, stride, lph_p, cin_p), lambda b: (b, 0, 0, 0)),
        pl.BlockSpec((KK * cin_p, cout_p), lambda b: (0, 0), **const),
        pl.BlockSpec((2, cout_p), lambda b: (0, 0), **const),
        pl.BlockSpec((KK * cout_p, cout_p), lambda b: (0, 0), **const),
        pl.BlockSpec((2, cout_p), lambda b: (0, 0), **const),
    ]
    args = [xph, prepped['w1'], prepped['sb1'], prepped['w2'], prepped['sb2']]
    if has_sc_conv:
        in_specs += [pl.BlockSpec((cin_p, cout_p), lambda b: (0, 0), **const),
                     pl.BlockSpec((2, cout_p), lambda b: (0, 0), **const)]
        args += [prepped['ws'], prepped['sbs']]

    # VMEM budget: double-buffered activations, single-buffered constants, scratch.
    w_bytes = sum(int(v.size) * v.dtype.itemsize for v in prepped.values())
    est = (2 * bt * stride * lph_p * cin_p * 2      # xph   (bf16, 2 buffers)
           + 2 * bt * l_out_p * cout_p * 2          # out   (bf16, 2 buffers)
           + bt * h1_rows * cout_p * 2              # h1 scratch (bf16)
           + w_bytes)                               # constants (1 buffer each)
    vmem_limit = int(min(max(2 * est, 32 << 20), 64 << 20))

    out = pl.pallas_call(
        functools.partial(_residual_block_kernel, stride=stride, l_out=l_out,
                          l_out_p=l_out_p, bt=bt, has_sc_conv=has_sc_conv),
        out_shape=jax.ShapeDtypeStruct((B * l_out_p, cout_p), jnp.bfloat16),
        grid_spec=pltpu.PrefetchScalarGridSpec(
            num_scalar_prefetch=0,
            grid=(n_steps,),
            in_specs=in_specs,
            out_specs=pl.BlockSpec((bt * l_out_p, cout_p), lambda b: (b, 0)),
            scratch_shapes=[pltpu.VMEM((bt, h1_rows, cout_p), jnp.bfloat16)]),
        compiler_params=pltpu.CompilerParams(
            # NOTE: on v7x (2 TCs) prefer bt <= B//2 so the parallel grid has >= 2
            # steps; on v5e/v6e (1 TC) the largest per-step tile wins instead.
            dimension_semantics=("parallel",),
            vmem_limit_bytes=vmem_limit),
    )(*args)

    # Drop length/channel padding, back to torch layout (B, Cout, Lout) & dtype.
    out = out.reshape(B, l_out_p, cout_p)[:, :l_out, :out_channels]
    return jnp.transpose(out, (0, 2, 1)).astype(x.dtype)


# --------------------------------------------------------------------------- #
# Pure-JAX reference (mirrors the torch module with eval-mode BatchNorm).
# --------------------------------------------------------------------------- #
def residual_block_ref(x, raw, stride, eps=BN_EPS):
    dn = ('NCH', 'OIH', 'NCH')
    prec = lax.Precision.HIGHEST

    def conv(h, w, s, pad):
        return lax.conv_general_dilated(
            h, w, window_strides=(s,), padding=[(pad, pad)],
            dimension_numbers=dn, precision=prec)

    def bn(h, p):
        scale = p['gamma'] / jnp.sqrt(p['var'] + eps)
        shift = p['beta'] - p['mean'] * scale
        return h * scale[None, :, None] + shift[None, :, None]

    h = jax.nn.relu(bn(conv(x, raw['w1'], stride, PAD), raw['bn1']))
    y = bn(conv(h, raw['w2'], 1, PAD), raw['bn2'])
    sc = bn(conv(x, raw['ws'], stride, 0), raw['bns']) if 'ws' in raw else x
    return jax.nn.relu(y + sc)


if __name__ == "__main__":
    key = jax.random.PRNGKey(0)

    def conv_w(k, cout, cin, kk):
        return (jax.random.normal(k, (cout, cin, kk), jnp.float32)
                * (2.0 / (cin * kk)) ** 0.5)

    def bn_params(k, c):
        kg, kb, km, kv = jax.random.split(k, 4)
        return dict(gamma=1.0 + 0.1 * jax.random.normal(kg, (c,), jnp.float32),
                    beta=0.1 * jax.random.normal(kb, (c,), jnp.float32),
                    mean=0.1 * jax.random.normal(km, (c,), jnp.float32),
                    var=0.5 + jax.random.uniform(kv, (c,), jnp.float32))

    def make_block(k, in_c, out_c, stride):
        kw1, kw2, kws, kb1, kb2, kbs = jax.random.split(k, 6)
        raw = dict(w1=conv_w(kw1, out_c, in_c, KK), bn1=bn_params(kb1, out_c),
                   w2=conv_w(kw2, out_c, out_c, KK), bn2=bn_params(kb2, out_c))
        if stride != 1 or in_c != out_c:
            raw['ws'] = conv_w(kws, out_c, in_c, 1)
            raw['bns'] = bn_params(kbs, out_c)
        return raw

    # Two small configs consistent with the module (file global in_channels=64):
    #  (a) down-sampling block 64 -> 100 channels, stride 2 (conv-shortcut path)
    #  (b) identity block 64 -> 64 channels, stride 1 (identity-shortcut path)
    configs = [dict(B=2, L=32, in_c=64, out_c=100, stride=2),
               dict(B=2, L=32, in_c=64, out_c=64, stride=1)]

    k_blk, _ = jax.random.split(key)
    for i, cfg in enumerate(configs):
        kb, kx = jax.random.split(jax.random.fold_in(k_blk, i))
        raw = make_block(kb, cfg['in_c'], cfg['out_c'], cfg['stride'])
        x = jax.random.normal(kx, (cfg['B'], cfg['in_c'], cfg['L']), jnp.float32)

        prepped = prepare_residual_block_params(raw, cfg['in_c'], cfg['out_c'],
                                                cfg['stride'])
        fwd = jax.jit(functools.partial(residual_block_forward,
                                        in_channels=cfg['in_c'],
                                        out_channels=cfg['out_c'],
                                        stride=cfg['stride']))
        out = jax.block_until_ready(fwd(prepped, x))

        l_out = (cfg['L'] + 2 * PAD - KK) // cfg['stride'] + 1
        assert out.shape == (cfg['B'], cfg['out_c'], l_out), out.shape
        assert bool(jnp.all(jnp.isfinite(out)))

        ref = residual_block_ref(x, raw, cfg['stride'])
        err = float(jnp.max(jnp.abs(out - ref)))
        scale = max(1.0, float(jnp.max(jnp.abs(ref))))
        assert err <= 2e-2 * scale, f"config {i}: max abs err {err} (scale {scale})"

    print("KERNEL_OK")
</pallas_src>

<mosaic_0001>
module attributes {stable_mosaic.version = 11 : i64} {
  func.func @_residual_block_kernel(%arg0: i32, %arg1: memref<2x2x24x128xbf16, #tpu.memory_space<vmem>>, %arg2: memref<640x128xbf16, #tpu.memory_space<vmem>>, %arg3: memref<2x128xf32, #tpu.memory_space<vmem>>, %arg4: memref<640x128xbf16, #tpu.memory_space<vmem>>, %arg5: memref<2x128xf32, #tpu.memory_space<vmem>>, %arg6: memref<128x128xbf16, #tpu.memory_space<vmem>>, %arg7: memref<2x128xf32, #tpu.memory_space<vmem>>, %arg8: memref<32x128xbf16, #tpu.memory_space<vmem>>, %arg9: memref<2x32x128xbf16, #tpu.memory_space<vmem>>) attributes {dimension_semantics = [#tpu.dimension_semantics<parallel>], iteration_bounds = array<i64: 1>, scalar_prefetch = 0 : i64, scratch_operands = 1 : i64, tpu.core_type = #tpu.core_type<tc>, window_params = [{transform_indices = @transform_0, window_bounds = array<i64: 2, 2, 24, 128>}, {pipeline_mode = #tpu.pipeline_mode<synchronous>, transform_indices = @transform_1, window_bounds = array<i64: 640, 128>}, {pipeline_mode = #tpu.pipeline_mode<synchronous>, transform_indices = @transform_2, window_bounds = array<i64: 2, 128>}, {pipeline_mode = #tpu.pipeline_mode<synchronous>, transform_indices = @transform_3, window_bounds = array<i64: 640, 128>}, {pipeline_mode = #tpu.pipeline_mode<synchronous>, transform_indices = @transform_4, window_bounds = array<i64: 2, 128>}, {pipeline_mode = #tpu.pipeline_mode<synchronous>, transform_indices = @transform_5, window_bounds = array<i64: 128, 128>}, {pipeline_mode = #tpu.pipeline_mode<synchronous>, transform_indices = @transform_6, window_bounds = array<i64: 2, 128>}, {transform_indices = @transform_7, window_bounds = array<i64: 32, 128>}]} {
    %c0 = arith.constant 0 : index
    %c0_0 = arith.constant 0 : index
    %c0_1 = arith.constant 0 : index
    %c0_2 = arith.constant 0 : index
    %0 = vector.load %arg1[%c0, %c0_0, %c0_1, %c0_2] : memref<2x2x24x128xbf16, #tpu.memory_space<vmem>>, vector<1x1x16x128xbf16>
    %1 = vector.shape_cast %0 : vector<1x1x16x128xbf16> to vector<16x128xbf16>
    %c0_3 = arith.constant 0 : index
    %c1 = arith.constant 1 : index
    %c0_4 = arith.constant 0 : index
    %c0_5 = arith.constant 0 : index
    %2 = vector.load %arg1[%c0_3, %c1, %c0_4, %c0_5] : memref<2x2x24x128xbf16, #tpu.memory_space<vmem>>, vector<1x1x16x128xbf16>
    %3 = vector.shape_cast %2 : vector<1x1x16x128xbf16> to vector<16x128xbf16>
    %c0_6 = arith.constant 0 : index
    %c0_7 = arith.constant 0 : index
    %c1_8 = arith.constant 1 : index
    %c0_9 = arith.constant 0 : index
    %4 = vector.load %arg1[%c0_6, %c0_7, %c1_8, %c0_9] : memref<2x2x24x128xbf16, #tpu.memory_space<vmem>>, vector<1x1x16x128xbf16>
    %5 = vector.shape_cast %4 : vector<1x1x16x128xbf16> to vector<16x128xbf16>
    %c0_10 = arith.constant 0 : index
    %c1_11 = arith.constant 1 : index
    %c1_12 = arith.constant 1 : index
    %c0_13 = arith.constant 0 : index
    %6 = vector.load %arg1[%c0_10, %c1_11, %c1_12, %c0_13] : memref<2x2x24x128xbf16, #tpu.memory_space<vmem>>, vector<1x1x16x128xbf16>
    %7 = vector.shape_cast %6 : vector<1x1x16x128xbf16> to vector<16x128xbf16>
    %c0_14 = arith.constant 0 : index
    %c0_15 = arith.constant 0 : index
    %c2 = arith.constant 2 : index
    %c0_16 = arith.constant 0 : index
    %8 = vector.load %arg1[%c0_14, %c0_15, %c2, %c0_16] : memref<2x2x24x128xbf16, #tpu.memory_space<vmem>>, vector<1x1x16x128xbf16>
    %9 = vector.shape_cast %8 : vector<1x1x16x128xbf16> to vector<16x128xbf16>
    %10 = tpu.concatenate %1, %3, %5, %7, %9 in 1 : vector<16x128xbf16>, vector<16x128xbf16>, vector<16x128xbf16>, vector<16x128xbf16>, vector<16x128xbf16> -> vector<16x640xbf16>
    %c1_17 = arith.constant 1 : index
    %c0_18 = arith.constant 0 : index
    %c0_19 = arith.constant 0 : index
    %c0_20 = arith.constant 0 : index
    %11 = vector.load %arg1[%c1_17, %c0_18, %c0_19, %c0_20] : memref<2x2x24x128xbf16, #tpu.memory_space<vmem>>, vector<1x1x16x128xbf16>
    %12 = vector.shape_cast %11 : vector<1x1x16x128xbf16> to vector<16x128xbf16>
    %c1_21 = arith.constant 1 : index
    %c1_22 = arith.constant 1 : index
    %c0_23 = arith.constant 0 : index
    %c0_24 = arith.constant 0 : index
    %13 = vector.load %arg1[%c1_21, %c1_22, %c0_23, %c0_24] : memref<2x2x24x128xbf16, #tpu.memory_space<vmem>>, vector<1x1x16x128xbf16>
    %14 = vector.shape_cast %13 : vector<1x1x16x128xbf16> to vector<16x128xbf16>
    %c1_25 = arith.constant 1 : index
    %c0_26 = arith.constant 0 : index
    %c1_27 = arith.constant 1 : index
    %c0_28 = arith.constant 0 : index
    %15 = vector.load %arg1[%c1_25, %c0_26, %c1_27, %c0_28] : memref<2x2x24x128xbf16, #tpu.memory_space<vmem>>, vector<1x1x16x128xbf16>
    %16 = vector.shape_cast %15 : vector<1x1x16x128xbf16> to vector<16x128xbf16>
    %c1_29 = arith.constant 1 : index
    %c1_30 = arith.constant 1 : index
    %c1_31 = arith.constant 1 : index
    %c0_32 = arith.constant 0 : index
    %17 = vector.load %arg1[%c1_29, %c1_30, %c1_31, %c0_32] : memref<2x2x24x128xbf16, #tpu.memory_space<vmem>>, vector<1x1x16x128xbf16>
    %18 = vector.shape_cast %17 : vector<1x1x16x128xbf16> to vector<16x128xbf16>
    %c1_33 = arith.constant 1 : index
    %c0_34 = arith.constant 0 : index
    %c2_35 = arith.constant 2 : index
    %c0_36 = arith.constant 0 : index
    %19 = vector.load %arg1[%c1_33, %c0_34, %c2_35, %c0_36] : memref<2x2x24x128xbf16, #tpu.memory_space<vmem>>, vector<1x1x16x128xbf16>
    %20 = vector.shape_cast %19 : vector<1x1x16x128xbf16> to vector<16x128xbf16>
    %21 = tpu.concatenate %12, %14, %16, %18, %20 in 1 : vector<16x128xbf16>, vector<16x128xbf16>, vector<16x128xbf16>, vector<16x128xbf16>, vector<16x128xbf16> -> vector<16x640xbf16>
    %22 = tpu.concatenate %10, %21 in 0 : vector<16x640xbf16>, vector<16x640xbf16> -> vector<32x640xbf16>
    %c0_37 = arith.constant 0 : index
    %c0_38 = arith.constant 0 : index
    %23 = vector.load %arg2[%c0_37, %c0_38] : memref<640x128xbf16, #tpu.memory_space<vmem>>, vector<640x128xbf16>
    %cst = arith.constant dense<0.000000e+00> : vector<32x128xf32>
    %24 = tpu.matmul %22, %23, %cst {dimension_numbers = #tpu.dot_dimension_numbers<[1], [0], [0], [1], [0, 0, 1, 1], [], []>} : vector<32x640xbf16>, vector<640x128xbf16>, vector<32x128xf32> -> vector<32x128xf32>
    %c0_39 = arith.constant 0 : index
    %c0_40 = arith.constant 0 : index
    %25 = vector.load %arg3[%c0_39, %c0_40] : memref<2x128xf32, #tpu.memory_space<vmem>>, vector<1x128xf32>
    %26 = vector.broadcast %25 : vector<1x128xf32> to vector<32x128xf32>
    %27 = arith.mulf %24, %26 : vector<32x128xf32>
    %c1_41 = arith.constant 1 : index
    %c0_42 = arith.constant 0 : index
    %28 = vector.load %arg3[%c1_41, %c0_42] : memref<2x128xf32, #tpu.memory_space<vmem>>, vector<1x128xf32>
    %29 = vector.broadcast %28 : vector<1x128xf32> to vector<32x128xf32>
    %30 = arith.addf %27, %29 : vector<32x128xf32>
    %cst_43 = arith.constant 0.000000e+00 : f32
    %31 = vector.broadcast %cst_43 : f32 to vector<32x128xf32>
    %32 = arith.maximumf %30, %31 : vector<32x128xf32>
    %33 = arith.truncf %32 : vector<32x128xf32> to vector<32x128xbf16>
    %cst_44 = arith.constant 0.000000e+00 : bf16
    %34 = vector.broadcast %cst_44 : bf16 to vector<8x128xbf16>
    %35 = vector.extract_strided_slice %33 {offsets = [0, 0], sizes = [16, 128], strides = [1, 1]} : vector<32x128xbf16> to vector<16x128xbf16>
    %36 = tpu.concatenate %34, %35, %34 in 0 : vector<8x128xbf16>, vector<16x128xbf16>, vector<8x128xbf16> -> vector<32x128xbf16>
    %c0_45 = arith.constant 0 : index
    %c0_46 = arith.constant 0 : index
    %c0_47 = arith.constant 0 : index
    %37 = vector.load %arg9[%c0_45, %c0_46, %c0_47] : memref<2x32x128xbf16, #tpu.memory_space<vmem>>, vector<1x32x128xbf16>
    %38 = vector.shape_cast %37 : vector<1x32x128xbf16> to vector<32x128xbf16>
    %39 = vector.shape_cast %36 : vector<32x128xbf16> to vector<1x32x128xbf16>
    tpu.vector_store %arg9[%c0_45, %c0_46, %c0_47], %39 {strides = array<i32>} : memref<2x32x128xbf16, #tpu.memory_space<vmem>>, vector<1x32x128xbf16>,
    %40 = vector.extract_strided_slice %33 {offsets = [16, 0], sizes = [16, 128], strides = [1, 1]} : vector<32x128xbf16> to vector<16x128xbf16>
    %41 = tpu.concatenate %34, %40, %34 in 0 : vector<8x128xbf16>, vector<16x128xbf16>, vector<8x128xbf16> -> vector<32x128xbf16>
    %c1_48 = arith.constant 1 : index
    %c0_49 = arith.constant 0 : index
    %c0_50 = arith.constant 0 : index
    %42 = vector.load %arg9[%c1_48, %c0_49, %c0_50] : memref<2x32x128xbf16, #tpu.memory_space<vmem>>, vector<1x32x128xbf16>
    %43 = vector.shape_cast %42 : vector<1x32x128xbf16> to vector<32x128xbf16>
    %44 = vector.shape_cast %41 : vector<32x128xbf16> to vector<1x32x128xbf16>
    tpu.vector_store %arg9[%c1_48, %c0_49, %c0_50], %44 {strides = array<i32>} : memref<2x32x128xbf16, #tpu.memory_space<vmem>>, vector<1x32x128xbf16>,
    %c0_51 = arith.constant 0 : index
    %c6 = arith.constant 6 : index
    %c0_52 = arith.constant 0 : index
    %45 = vector.load %arg9[%c0_51, %c6, %c0_52] : memref<2x32x128xbf16, #tpu.memory_space<vmem>>, vector<1x16x128xbf16>
    %46 = vector.shape_cast %45 : vector<1x16x128xbf16> to vector<16x128xbf16>
    %c0_53 = arith.constant 0 : index
    %c7 = arith.constant 7 : index
    %c0_54 = arith.constant 0 : index
    %47 = vector.load %arg9[%c0_53, %c7, %c0_54] : memref<2x32x128xbf16, #tpu.memory_space<vmem>>, vector<1x16x128xbf16>
    %48 = vector.shape_cast %47 : vector<1x16x128xbf16> to vector<16x128xbf16>
    %c0_55 = arith.constant 0 : index
    %c8 = arith.constant 8 : index
    %c0_56 = arith.constant 0 : index
    %49 = vector.load %arg9[%c0_55, %c8, %c0_56] : memref<2x32x128xbf16, #tpu.memory_space<vmem>>, vector<1x16x128xbf16>
    %50 = vector.shape_cast %49 : vector<1x16x128xbf16> to vector<16x128xbf16>
    %c0_57 = arith.constant 0 : index
    %c9 = arith.constant 9 : index
    %c0_58 = arith.constant 0 : index
    %51 = vector.load %arg9[%c0_57, %c9, %c0_58] : memref<2x32x128xbf16, #tpu.memory_space<vmem>>, vector<1x16x128xbf16>
    %52 = vector.shape_cast %51 : vector<1x16x128xbf16> to vector<16x128xbf16>
    %c0_59 = arith.constant 0 : index
    %c10 = arith.constant 10 : index
    %c0_60 = arith.constant 0 : index
    %53 = vector.load %arg9[%c0_59, %c10, %c0_60] : memref<2x32x128xbf16, #tpu.memory_space<vmem>>, vector<1x16x128xbf16>
    %54 = vector.shape_cast %53 : vector<1x16x128xbf16> to vector<16x128xbf16>
    %55 = tpu.concatenate %46, %48, %50, %52, %54 in 1 : vector<16x128xbf16>, vector<16x128xbf16>, vector<16x128xbf16>, vector<16x128xbf16>, vector<16x128xbf16> -> vector<16x640xbf16>
    %c1_61 = arith.constant 1 : index
    %c6_62 = arith.constant 6 : index
    %c0_63 = arith.constant 0 : index
    %56 = vector.load %arg9[%c1_61, %c6_62, %c0_63] : memref<2x32x128xbf16, #tpu.memory_space<vmem>>, vector<1x16x128xbf16>
    %57 = vector.shape_cast %56 : vector<1x16x128xbf16> to vector<16x128xbf16>
    %c1_64 = arith.constant 1 : index
    %c7_65 = arith.constant 7 : index
    %c0_66 = arith.constant 0 : index
    %58 = vector.load %arg9[%c1_64, %c7_65, %c0_66] : memref<2x32x128xbf16, #tpu.memory_space<vmem>>, vector<1x16x128xbf16>
    %59 = vector.shape_cast %58 : vector<1x16x128xbf16> to vector<16x128xbf16>
    %c1_67 = arith.constant 1 : index
    %c8_68 = arith.constant 8 : index
    %c0_69 = arith.constant 0 : index
    %60 = vector.load %arg9[%c1_67, %c8_68, %c0_69] : memref<2x32x128xbf16, #tpu.memory_space<vmem>>, vector<1x16x128xbf16>
    %61 = vector.shape_cast %60 : vector<1x16x128xbf16> to vector<16x128xbf16>
    %c1_70 = arith.constant 1 : index
    %c9_71 = arith.constant 9 : index
    %c0_72 = arith.constant 0 : index
    %62 = vector.load %arg9[%c1_70, %c9_71, %c0_72] : memref<2x32x128xbf16, #tpu.memory_space<vmem>>, vector<1x16x128xbf16>
    %63 = vector.shape_cast %62 : vector<1x16x128xbf16> to vector<16x128xbf16>
    %c1_73 = arith.constant 1 : index
    %c10_74 = arith.constant 10 : index
    %c0_75 = arith.constant 0 : index
    %64 = vector.load %arg9[%c1_73, %c10_74, %c0_75] : memref<2x32x128xbf16, #tpu.memory_space<vmem>>, vector<1x16x128xbf16>
    %65 = vector.shape_cast %64 : vector<1x16x128xbf16> to vector<16x128xbf16>
    %66 = tpu.concatenate %57, %59, %61, %63, %65 in 1 : vector<16x128xbf16>, vector<16x128xbf16>, vector<16x128xbf16>, vector<16x128xbf16>, vector<16x128xbf16> -> vector<16x640xbf16>
    %67 = tpu.concatenate %55, %66 in 0 : vector<16x640xbf16>, vector<16x640xbf16> -> vector<32x640xbf16>
    %c0_76 = arith.constant 0 : index
    %c0_77 = arith.constant 0 : index
    %68 = vector.load %arg4[%c0_76, %c0_77] : memref<640x128xbf16, #tpu.memory_space<vmem>>, vector<640x128xbf16>
    %cst_78 = arith.constant dense<0.000000e+00> : vector<32x128xf32>
    %69 = tpu.matmul %67, %68, %cst_78 {dimension_numbers = #tpu.dot_dimension_numbers<[1], [0], [0], [1], [0, 0, 1, 1], [], []>} : vector<32x640xbf16>, vector<640x128xbf16>, vector<32x128xf32> -> vector<32x128xf32>
    %c0_79 = arith.constant 0 : index
    %c0_80 = arith.constant 0 : index
    %70 = vector.load %arg5[%c0_79, %c0_80] : memref<2x128xf32, #tpu.memory_space<vmem>>, vector<1x128xf32>
    %71 = vector.broadcast %70 : vector<1x128xf32> to vector<32x128xf32>
    %72 = arith.mulf %69, %71 : vector<32x128xf32>
    %c1_81 = arith.constant 1 : index
    %c0_82 = arith.constant 0 : index
    %73 = vector.load %arg5[%c1_81, %c0_82] : memref<2x128xf32, #tpu.memory_space<vmem>>, vector<1x128xf32>
    %74 = vector.broadcast %73 : vector<1x128xf32> to vector<32x128xf32>
    %75 = arith.addf %72, %74 : vector<32x128xf32>
    %76 = vector.extract_strided_slice %22 {offsets = [0, 256], sizes = [32, 128], strides = [1, 1]} : vector<32x640xbf16> to vector<32x128xbf16>
    %c0_83 = arith.constant 0 : index
    %c0_84 = arith.constant 0 : index
    %77 = vector.load %arg6[%c0_83, %c0_84] : memref<128x128xbf16, #tpu.memory_space<vmem>>, vector<128x128xbf16>
    %cst_85 = arith.constant dense<0.000000e+00> : vector<32x128xf32>
    %78 = tpu.matmul %76, %77, %cst_85 {dimension_numbers = #tpu.dot_dimension_numbers<[1], [0], [0], [1], [0, 0, 1, 1], [], []>} : vector<32x128xbf16>, vector<128x128xbf16>, vector<32x128xf32> -> vector<32x128xf32>
    %c0_86 = arith.constant 0 : index
    %c0_87 = arith.constant 0 : index
    %79 = vector.load %arg7[%c0_86, %c0_87] : memref<2x128xf32, #tpu.memory_space<vmem>>, vector<1x128xf32>
    %80 = vector.broadcast %79 : vector<1x128xf32> to vector<32x128xf32>
    %81 = arith.mulf %78, %80 : vector<32x128xf32>
    %c1_88 = arith.constant 1 : index
    %c0_89 = arith.constant 0 : index
    %82 = vector.load %arg7[%c1_88, %c0_89] : memref<2x128xf32, #tpu.memory_space<vmem>>, vector<1x128xf32>
    %83 = vector.broadcast %82 : vector<1x128xf32> to vector<32x128xf32>
    %84 = arith.addf %81, %83 : vector<32x128xf32>
    %85 = arith.addf %75, %84 : vector<32x128xf32>
    %cst_90 = arith.constant 0.000000e+00 : f32
    %86 = vector.broadcast %cst_90 : f32 to vector<32x128xf32>
    %87 = arith.maximumf %85, %86 : vector<32x128xf32>
    %88 = arith.truncf %87 : vector<32x128xf32> to vector<32x128xbf16>
    %c0_91 = arith.constant 0 : index
    %c0_92 = arith.constant 0 : index
    %89 = vector.load %arg8[%c0_91, %c0_92] : memref<32x128xbf16, #tpu.memory_space<vmem>>, vector<32x128xbf16>
    tpu.vector_store %arg8[%c0_91, %c0_92], %88 {strides = array<i32>} : memref<32x128xbf16, #tpu.memory_space<vmem>>, vector<32x128xbf16>,
    return
  }
  func.func @transform_0(%arg0: i32) -> (i32, i32, i32, i32) {
    %c0_i32 = arith.constant 0 : i32
    %c0_i32_0 = arith.constant 0 : i32
    %c0_i32_1 = arith.constant 0 : i32
    %c0_i32_2 = arith.constant 0 : i32
    return %arg0, %c0_i32, %c0_i32_0, %c0_i32_1 : i32, i32, i32, i32
  }
  func.func @transform_1(%arg0: i32) -> (i32, i32) {
    %c0_i32 = arith.constant 0 : i32
    %c0_i32_0 = arith.constant 0 : i32
    %c0_i32_1 = arith.constant 0 : i32
    return %c0_i32, %c0_i32_0 : i32, i32
  }
  func.func @transform_2(%arg0: i32) -> (i32, i32) {
    %c0_i32 = arith.constant 0 : i32
    %c0_i32_0 = arith.constant 0 : i32
    %c0_i32_1 = arith.constant 0 : i32
    return %c0_i32, %c0_i32_0 : i32, i32
  }
  func.func @transform_3(%arg0: i32) -> (i32, i32) {
    %c0_i32 = arith.constant 0 : i32
    %c0_i32_0 = arith.constant 0 : i32
    %c0_i32_1 = arith.constant 0 : i32
    return %c0_i32, %c0_i32_0 : i32, i32
  }
  func.func @transform_4(%arg0: i32) -> (i32, i32) {
    %c0_i32 = arith.constant 0 : i32
    %c0_i32_0 = arith.constant 0 : i32
    %c0_i32_1 = arith.constant 0 : i32
    return %c0_i32, %c0_i32_0 : i32, i32
  }
  func.func @transform_5(%arg0: i32) -> (i32, i32) {
    %c0_i32 = arith.constant 0 : i32
    %c0_i32_0 = arith.constant 0 : i32
    %c0_i32_1 = arith.constant 0 : i32
    return %c0_i32, %c0_i32_0 : i32, i32
  }
  func.func @transform_6(%arg0: i32) -> (i32, i32) {
    %c0_i32 = arith.constant 0 : i32
    %c0_i32_0 = arith.constant 0 : i32
    %c0_i32_1 = arith.constant 0 : i32
    return %c0_i32, %c0_i32_0 : i32, i32
  }
  func.func @transform_7(%arg0: i32) -> (i32, i32) {
    %c0_i32 = arith.constant 0 : i32
    %c0_i32_0 = arith.constant 0 : i32
    return %arg0, %c0_i32 : i32, i32
  }
}

</mosaic_0001>

<bundles_post_ra>
// kernel: residual_block_forward.1
= control target key start
LH: loop header
LB: loop body
LE: loop exit
PB: predicated region body
PF: predicated region fallthrough
CT: control target
= control target key end

     0   :  { %12 = vsyncpa [#allocation4], 0  ;;  %s2178_s0 = inlined_call_operand.vmem [shape: bf16[2,2,24,128], index: 0, kind: input, shape index: {}]   ;;  %s2179_s1 = inlined_call_operand.hbm [shape: bf16[640,128], index: 1, kind: input, shape index: {}]   ;;  %s2180_s2 = inlined_call_operand.vmem [shape: f32[2,128], index: 2, kind: input, shape index: {}]   ;;  %s2181_s3 = inlined_call_operand.hbm [shape: bf16[640,128], index: 3, kind: input, shape index: {}]   ;;  %s2182_s4 = inlined_call_operand.vmem [shape: f32[2,128], index: 4, kind: input, shape index: {}]   ;;  %s2183_s5 = inlined_call_operand.vmem [shape: bf16[128,128], index: 5, kind: input, shape index: {}]   ;;  %s2184_s6 = inlined_call_operand.vmem [shape: f32[2,128], index: 6, kind: input, shape index: {}]   ;;  %s2185_s7 = inlined_call_operand.vmem [shape: bf16[32,128], index: 7, kind: output, shape index: {}]  }
   0x1   :  { %13 = vsyncpa [#allocation6], 0  ;;  %s1966_s24 = smov [#allocation3]   ;;  %s1918_s28 = scalar_lea.hbm %s2179_s1, 5120 }
   0x2   :  { %s21_s25 = sshll.u32 %s1966_s24, 4  ;;  %p1919_p0 = scmp.ne.s32.totalorder %s2179_s1, %s1918_s28  ;;  %s22_s25 = int_to_ptr.vmem [resolvable:$true] %s21_s25 }
   0x3   :  { %p1922_p1 = scmp.lt.u32.totalorder %s1918_s28, %s2179_s1 }
   0x5   :  { %p1924_p2 = pnand %p1922_p1, %p1919_p0 }
   0x7   :  { %1927 = shalt.err (!%p1924_p2)
}
   0x8   :  { %s1928_s10 = scalar_lea.vmem %s22_s25, 5120  ;;  %p1933_p4 = scmp.lt.s32.totalorder %s22_s25, %s22_s25 }
   0x9   :  { %p1929_p3 = scmp.ne.s32.totalorder %s22_s25, %s1928_s10  ;;  %p1934_p5 = scmp.lt.s32.totalorder %s1928_s10, %s1928_s10 }
   0xb   :  { %p1935_p6 = por %p1934_p5, %p1933_p4 }
   0xd   :  { %p1936_p7 = pnand %p1935_p6, %p1929_p3 }
   0xf   :  { %1939 = shalt.err (!%p1936_p7)
}
  0x10   :  { %s1967_s11 = smov 64   ;;  %s1968_s12 = smov 4  }
  0x11   :  { %27 = dma.hbm_to_vmem [thread:$0]  %s2179_s1, 5120, %s22_s25, [#allocation4], %s1967_s11, %s1967_s11, %s1968_s12  }
  0x12   :  { %s1969_s15 = smov [#allocation5]   ;;  %s1940_s19 = scalar_lea.hbm %s2181_s3, 5120 }
  0x13   :  { %s35_s16 = sshll.u32 %s1969_s15, 4  ;;  %p1941_p8 = scmp.ne.s32.totalorder %s2181_s3, %s1940_s19  ;;  %s36_s16 = int_to_ptr.vmem [resolvable:$true] %s35_s16 }
  0x14   :  { %p1944_p9 = scmp.lt.u32.totalorder %s1940_s19, %s2181_s3 }
  0x16   :  { %p1946_p10 = pnand %p1944_p9, %p1941_p8 }
  0x18   :  { %1949 = shalt.err (!%p1946_p10)
}
  0x19   :  { %s1950_s24 = scalar_lea.vmem %s36_s16, 5120  ;;  %p1955_p12 = scmp.lt.s32.totalorder %s36_s16, %s36_s16 }
  0x1a   :  { %p1951_p11 = scmp.ne.s32.totalorder %s36_s16, %s1950_s24  ;;  %p1956_p13 = scmp.lt.s32.totalorder %s1950_s24, %s1950_s24 }
  0x1c   :  { %p1957_p0 = por %p1956_p13, %p1955_p12 }
  0x1e   :  { %p1958_p1 = pnand %p1957_p0, %p1951_p11 }
  0x20   :  { %1961 = shalt.err (!%p1958_p1)
}
  0x21   :  { %41 = dma.hbm_to_vmem [thread:$0]  %s2181_s3, 5120, %s36_s16, [#allocation6], %s1967_s11, %s1967_s11, %s1968_s12  }
  0x22   :  { %1962 = dma.done.wait [#allocation4], 5120  }
  0x23   :  { %1963 = vsyncadd [#allocation4], 4294962176 }
  0x24   :  { %1964 = dma.done.wait [#allocation6], 5120  }
  0x25   :  { %1965 = vsyncadd [#allocation6], 4294962176  ;;  %v1820_v0 = vld [vmem:[#allocation3 + $0x40] sm:$0xff]   ;;  %v1824_v4 = vld [vmem:[#allocation3 + $0x48] sm:$0xff]   ;;  %vm78_vm0 = vsmask.f32 7424 }
  0x26   :  { %v1821_v1 = vld [vmem:[#allocation3 + $0xc0] sm:$0xff]   ;;  %1614 = vmatprep.subr.bf16.mxu0 %v1820_v0  ;;  %v1825_v5 = vld [vmem:[#allocation3 + $0xc8] sm:$0xff]   ;;  %v1828_v8 = vld [vmem:[#allocation3 + $0x50] sm:$0xff]   ;;  %vm111_vm1 = vcmask 1046528   ;;  %vm669_vm2 = vcmask 1043456   ;;  %vm788_vm3 = vcmask 1044480  }
  0x27   :  { %v1822_v2 = vld [vmem:[#allocation3] sm:$0xff]   ;;  %1642 = vmatprep.subr.bf16.mxu1 %v1821_v1  ;;  %v1826_v6 = vld [vmem:[#allocation3 + $0x8] sm:$0xff]   ;;  %v1829_v9 = vld [vmem:[#allocation3 + $0xd0] sm:$0xff]   ;;  %vm714_vm4 = vsmask.f32 6400  ;;  %vm734_vm5 = vcmask 1045504  }
  0x28   :  { %v1823_v3 = vld [vmem:[#allocation3 + $0x80] sm:$0xff]   ;;  %1615 = vmatpush3.bf16.msra.mxu0 %v1822_v2  ;;  %v1827_v7 = vld [vmem:[#allocation3 + $0x88] sm:$0xff]   ;;  %v1830_v10 = vld [vmem:[#allocation3 + $0x10] sm:$0xff]  }
  0x29   :  { %1643 = vmatpush3.bf16.msra.mxu1 %v1823_v3  ;;  %1616 = vmatprep.subr.bf16.mxu0 %v1824_v4  ;;  %v1831_v11 = vld [vmem:[#allocation3 + $0x90] sm:$0xff]   ;;  %v1832_v12 = vld [vmem:[#allocation3 + $0x58] sm:$0xff]   ;;  %v1836_v16 = vld [vmem:[#allocation3 + $0x60] sm:$0xff]  }
  0x2a   :  { %1644 = vmatprep.subr.bf16.mxu1 %v1825_v5  ;;  %v1833_v13 = vld [vmem:[#allocation3 + $0xd8] sm:$0xff]   ;;  %v1837_v17 = vld [vmem:[#allocation3 + $0xe0] sm:$0xff]   ;;  %v1840_v20 = vld [vmem:[#allocation3 + $0x68] sm:$0xff]  }
  0x2b   :  { %v1834_v14 = vld [vmem:[#allocation3 + $0x18] sm:$0xff]   ;;  %v1838_v18 = vld [vmem:[#allocation3 + $0x20] sm:$0xff]   ;;  %v1841_v21 = vld [vmem:[#allocation3 + $0xe8] sm:$0xff]  }
  0x2c   :  { %1617 = vmatpush3.bf16.msra.mxu0 %v1826_v6  ;;  %v1835_v15 = vld [vmem:[#allocation3 + $0x98] sm:$0xff]   ;;  %v1839_v19 = vld [vmem:[#allocation3 + $0xa0] sm:$0xff]   ;;  %v1842_v22 = vld [vmem:[#allocation3 + $0x28] sm:$0xff]  }
  0x2d   :  { %1645 = vmatpush3.bf16.msra.mxu1 %v1827_v7  ;;  %1618 = vmatprep.subr.bf16.mxu0 %v1828_v8  ;;  %v1843_v23 = vld [vmem:[#allocation3 + $0xa8] sm:$0xff]   ;;  %v1844_v24 = vld [vmem:[#allocation3 + $0x70] sm:$0xff]   ;;  %v1848_v28 = vld [vmem:[#allocation3 + $0x78] sm:$0xff]  }
  0x2e   :  { %1646 = vmatprep.subr.bf16.mxu1 %v1829_v9  ;;  %v1845_v25 = vld [vmem:[#allocation3 + $0xf0] sm:$0xff]   ;;  %v1849_v29 = vld [vmem:[#allocation3 + $0xf8] sm:$0xff]   ;;  %v1857_v34 = vld [vmem:[#allocation3 + $0x100] sm:$0xff]  }
  0x2f   :  { %v1846_v26 = vld [vmem:[#allocation3 + $0x30] sm:$0xff]   ;;  %v1850_v30 = vld [vmem:[#allocation3 + $0x38] sm:$0xff]   ;;  %v55_v37 = vld [vmem:[%s2178_s0] sm:$0xf] }
  0x30   :  { %1619 = vmatpush3.bf16.msra.mxu0 %v1830_v10  ;;  %v1847_v27 = vld [vmem:[#allocation3 + $0xb0] sm:$0xff]   ;;  %v1851_v31 = vld [vmem:[#allocation3 + $0xb8] sm:$0xff]   ;;  %v56_v38 = vld [vmem:[%s2178_s0 + $0x4] sm:$0xf] }
  0x31   :  { %1647 = vmatpush3.bf16.msra.mxu1 %v1831_v11  ;;  %1620 = vmatprep.subr.bf16.mxu0 %v1832_v12  ;;  %v1852_v32 = vld [vmem:[%s2178_s0 + $0xc] sm:$0xff]   ;;  %v1853_v33 = vld [vmem:[%s2178_s0 + $0x14] ss:$0 sps:$4 sm:$0x11]   ;;  %v1484_v40 = vcombine.low %v55_v37, %v56_v38  ;;  %v62_v45 = vld [vmem:[%s2178_s0] sm:$0xe] }
  0x32   :  { %1648 = vmatprep.subr.bf16.mxu1 %v1833_v13  ;;  %528 = vmatprep.mubr.bf16.mxu0 %v1852_v32  ;;  %v96_v35 = vshrl.u32 %v1852_v32, 16  ;;  %v98_v36 = vshll.u32 %v1852_v32, 16  ;;  %v103_v39 = vshll.u32 %v1853_v33, 16  ;;  %v1858_v41 = vld [vmem:[#allocation3 + $0x108] sm:$0xff]   ;;  %v1859_v51 = vld [vmem:[#allocation3 + $0x110] sm:$0xff]   ;;  %v1488_v56 = vcombine.low %v62_v45, %v56_v38  ;;  %v1860_v60 = vld [vmem:[#allocation3 + $0x118] sm:$0xff]  }
  0x33   :  { %v1856_v43 = vld [vmem:[%s2178_s0 + $0x8] ss:$0 sps:$4 sm:$0x11]   ;;  %v82_v46 = vshll.u32 %v1484_v40, 16  ;;  %v80_v47 = vshrl.u32 %v1484_v40, 16  ;;  %v1861_v0 = vld [vmem:[#allocation3 + $0x120] sm:$0xff]  }
  0x34   :  { %1621 = vmatpush3.bf16.msra.mxu0 %v1834_v14  ;;  %v100_v42 = vrot.slane %v98_v36, 1  ;;  %v105_v44 = vrot.slane %v103_v39, 1  ;;  %v87_v49 = vshll.u32 %v1856_v43, 16  ;;  %v1862_v54 = vld [vmem:[%s2178_s0 + $0x24] sm:$0xff]   ;;  %v1489_v63 = vld [vmem:[%s2178_s0 + $0x18] sm:$0xf] }
  0x35   :  { %1649 = vmatpush3.bf16.msra.mxu1 %v1835_v15  ;;  %1622 = vmatprep.subr.bf16.mxu0 %v1836_v16  ;;  %v84_v50 = vrot.slane %v82_v46, 1  ;;  %v159_v57 = vshll.u32 %v1862_v54, 16  ;;  %v157_v58 = vshrl.u32 %v1862_v54, 16  ;;  %v1863_v61 = vld [vmem:[%s2178_s0 + $0x2c] ss:$0 sps:$4 sm:$0x11]  }
  0x36   :  { %1650 = vmatprep.subr.bf16.mxu1 %v1837_v17  ;;  %v101_v48 = vor.u32 %v100_v42, %v96_v35  ;;  %v89_v53 = vrot.slane %v87_v49, 1  ;;  %v164_v1 = vshll.u32 %v1863_v61, 16  ;;  %v1490_v2 = vld [vmem:[%s2178_s0 + $0x1c] sm:$0xf]  ;;  %v1495_v3 = vld [vmem:[%s2178_s0 + $0x18] sm:$0xe] }
  0x37   :  { %v85_v55 = vor.u32 %v84_v50, %v80_v47  ;;  %v161_v62 = vrot.slane %v159_v57, 1  ;;  %v1496_v5 = vcombine.low %v1489_v63, %v1490_v2  ;;  %v1500_v6 = vcombine.low %v1495_v3, %v1490_v2  ;;  %v1867_v7 = vld [vmem:[%s2178_s0 + $0x20] ss:$0 sps:$4 sm:$0x11]   ;;  %v1864_v15 = vld [vmem:[#allocation3 + $0x128] sm:$0xff]   ;;  %v1879_v35 = vld [vmem:[#allocation5 + $0xd0] sm:$0xff]  }
  0x38   :  { %1623 = vmatpush3.bf16.msra.mxu0 %v1838_v18  ;;  %v106_v52 = vsel %vm78_vm0, %v101_v48, %v105_v44  ;;  %v112_v8 = vrot.slane %v1488_v56, 1  ;;  %v166_v9 = vrot.slane %v164_v1, 1  ;;  %v113_v10 = vrot.slane %v1856_v43, 1  ;;  %v1876_v32 = vld [vmem:[#allocation5 + $0x8] sm:$0xff]   ;;  %v1880_v36 = vld [vmem:[#allocation5 + $0x10] sm:$0xff]   ;;  %v1882_v38 = vld [vmem:[#allocation5 + $0x58] sm:$0xff]  }
  0x39   :  { %1651 = vmatpush3.bf16.msra.mxu1 %v1839_v19  ;;  %1624 = vmatprep.subr.bf16.mxu0 %v1840_v20  ;;  %v2057_v59 = vsel %vm78_vm0, %v85_v55, %v89_v53  ;;  %v162_v4 = vor.u32 %v161_v62, %v157_v58  ;;  %v143_v11 = vshll.u32 %v1496_v5, 16  ;;  %v141_v12 = vshrl.u32 %v1496_v5, 16  ;;  %v1877_v33 = vld [vmem:[#allocation5 + $0x88] sm:$0xff]   ;;  %v1881_v37 = vld [vmem:[#allocation5 + $0x90] sm:$0xff]   ;;  %v1883_v39 = vld [vmem:[#allocation5 + $0xd8] sm:$0xff]  }
  0x3a   :  { %1652 = vmatprep.subr.bf16.mxu1 %v1841_v21  ;;  %577 = vmatprep.mubr.bf16.mxu1 %v106_v52  ;;  %v148_v13 = vshll.u32 %v1867_v7, 16  ;;  %v172_v16 = vrot.slane %v1500_v6, 1  ;;  %v114_v17 = vsel %vm111_vm1, %v112_v8, %v113_v10  ;;  %v173_v18 = vrot.slane %v1867_v7, 1  ;;  %v1886_v42 = vld [vmem:[#allocation5 + $0x60] sm:$0xff]   ;;  %v1890_v46 = vld [vmem:[#allocation5 + $0x68] sm:$0xff]   ;;  %v1894_v50 = vld [vmem:[#allocation5 + $0x70] sm:$0xff]  }
  0x3b   :  { %v167_v14 = vsel %vm78_vm0, %v162_v4, %v166_v9  ;;  %v145_v19 = vrot.slane %v143_v11, 1  ;;  %v1887_v43 = vld [vmem:[#allocation5 + $0xe0] sm:$0xff]   ;;  %v1891_v47 = vld [vmem:[#allocation5 + $0xe8] sm:$0xff]   ;;  %v1896_v52 = vld [vmem:[#allocation5 + $0x30] sm:$0xff]  }
  0x3c   :  { %1625 = vmatpush3.bf16.msra.mxu0 %v1842_v22  ;;  %v150_v20 = vrot.slane %v148_v13, 1  ;;  %v1868_v22 = vld [vmem:[#allocation3 + $0x130] sm:$0xff]   ;;  %v1888_v44 = vld [vmem:[#allocation5 + $0x20] sm:$0xff]   ;;  %v1892_v48 = vld [vmem:[#allocation5 + $0x28] sm:$0xff]  }
  0x3d   :  { %1653 = vmatpush3.bf16.msra.mxu1 %v1843_v23  ;;  %1626 = vmatprep.subr.bf16.mxu0 %v1844_v24  ;;  %v146_v21 = vor.u32 %v145_v19, %v141_v12  ;;  %v1869_v24 = vld [vmem:[#allocation3 + $0x138] sm:$0xff]   ;;  %v1889_v45 = vld [vmem:[#allocation5 + $0xa0] sm:$0xff]   ;;  %v1893_v49 = vld [vmem:[#allocation5 + $0xa8] sm:$0xff]  }
  0x3e   :  { %1654 = vmatprep.subr.bf16.mxu1 %v1845_v25  ;;  %v174_v25 = vsel %vm111_vm1, %v172_v16, %v173_v18  ;;  %v1897_v53 = vld [vmem:[#allocation5 + $0xb0] sm:$0xff]   ;;  %v1899_v55 = vld [vmem:[#allocation5 + $0xf8] sm:$0xff]   ;;  %v2082_v58 = vld [vmem:[#allocation5 + $0x100] sm:$0xff]  }
  0x3f   :  { %v2078_v23 = vsel %vm78_vm0, %v146_v21, %v150_v20  ;;  %v1900_v56 = vld [vmem:[#allocation5 + $0x38] sm:$0xff]  }
  0x40   :  { %1627 = vmatpush3.bf16.msra.mxu0 %v1846_v26  ;;  %v1870_v26 = vld [vmem:[#allocation5 + $0x40] sm:$0xff]   ;;  %v1901_v57 = vld [vmem:[#allocation5 + $0xb8] sm:$0xff]  }
  0x41   :  { %1655 = vmatpush3.bf16.msra.mxu1 %v1847_v27  ;;  %1628 = vmatprep.subr.bf16.mxu0 %v1848_v28  ;;  %v1871_v27 = vld [vmem:[#allocation5 + $0xc0] sm:$0xff]  }
  0x42   :  { %1656 = vmatprep.subr.bf16.mxu1 %v1849_v29  ;;  %v1872_v28 = vld [vmem:[#allocation5] sm:$0xff]  }
  0x43   :  { %v1873_v29 = vld [vmem:[#allocation5 + $0x80] sm:$0xff]  }
  0x44   :  { %1629 = vmatpush3.bf16.msra.mxu0 %v1850_v30  ;;  %v1874_v30 = vld [vmem:[#allocation5 + $0x48] sm:$0xff]  }
  0x45   :  { %1657 = vmatpush3.bf16.msra.mxu1 %v1851_v31  ;;  %1756 = vmatprep.subr.bf16.mxu0 %v1857_v34  ;;  %v1875_v31 = vld [vmem:[#allocation5 + $0xc8] sm:$0xff]  }
  0x46   :  { %1680 = vmatprep.subr.bf16.mxu1 %v1870_v26 }
  0x47   :  { %529 = vmatmul.mubr.bf16.vlgmr.msra.gmra.mrb[0].mxu0 %v1484_v40  ;;  %v1884_v40 = vld [vmem:[#allocation5 + $0x18] sm:$0xff]  }
  0x48   :  { %1757 = vmatpush3.bf16.msra.mxu0 %v1857_v34  ;;  %536 = vmatprep.mubr.bf16.mxu0 %v1862_v54  ;;  %v1878_v34 = vld [vmem:[#allocation5 + $0x50] sm:$0xff]   ;;  %v1898_v54 = vld [vmem:[#allocation5 + $0x78] sm:$0xff]  }
  0x49   :  { %1758 = vmatprep.subr.bf16.mxu0 %v1858_v41  ;;  %578 = vmatmul.mubr.bf16.vlgmr.msra.gmra.mrb[0].mxu1 %v2057_v59 }
  0x4a   :  { %585 = vmatprep.mubr.bf16.mxu1 %v167_v14  ;;  %1681 = vmatpush3.bf16.msra.mxu1 %v1872_v28 }
  0x4b   :  { %1682 = vmatprep.subr.bf16.mxu1 %v1874_v30  ;;  %v1542_v30 = vld [vmem:[%s2180_s2 + $0x1] ss:$0 sm:$0xff] }
  0x4c   :  { %1759 = vmatpush3.bf16.msra.mxu0 %v1858_v41  ;;  %v1885_v41 = vld [vmem:[#allocation5 + $0x98] sm:$0xff]  }
  0x4d   :  { %1760 = vmatprep.subr.bf16.mxu0 %v1859_v51 }
  0x4e   :  { %1683 = vmatpush3.bf16.msra.mxu1 %v1876_v32 }
  0x4f   :  { %537 = vmatmul.mubr.bf16.gmra.mrb[4].mxu0 %v1496_v5  ;;  %1684 = vmatprep.subr.bf16.mxu1 %v1878_v34 }
  0x50   :  { %1761 = vmatpush3.bf16.msra.mxu0 %v1859_v51  ;;  %1772 = vmatprep.mubr.bf16.mxu0 %v114_v17  ;;  %v1895_v51 = vld [vmem:[#allocation5 + $0xf0] sm:$0xff]  }
  0x51   :  { %1762 = vmatprep.subr.bf16.mxu0 %v1860_v60  ;;  %586 = vmatmul.mubr.bf16.gmra.mrb[4].mxu1 %v2078_v23 }
  0x52   :  { %1685 = vmatpush3.bf16.msra.mxu1 %v1880_v36 }
  0x53   :  { %1686 = vmatprep.subr.bf16.mxu1 %v1882_v38 }
  0x54   :  { %1763 = vmatpush3.bf16.msra.mxu0 %v1860_v60  ;;  %v2087_v60 = vld [vmem:[%s2183_s5] sm:$0xff]  }
  0x55   :  { %1764 = vmatprep.subr.bf16.mxu0 %v1861_v0 }
  0x56   :  { %1687 = vmatpush3.bf16.msra.mxu1 %v1884_v40 }
  0x57   :  { %1688 = vmatprep.subr.bf16.mxu1 %v1886_v42 }
  0x58   :  { %1765 = vmatpush3.bf16.msra.mxu0 %v1861_v0 }
  0x59   :  { %1766 = vmatprep.subr.bf16.mxu0 %v1864_v15 }
  0x5a   :  { %1689 = vmatpush3.bf16.msra.mxu1 %v1888_v44 }
  0x5b   :  { %1690 = vmatprep.subr.bf16.mxu1 %v1890_v46 }
  0x5c   :  { %1767 = vmatpush3.bf16.msra.mxu0 %v1864_v15 }
  0x5d   :  { %1768 = vmatprep.subr.bf16.mxu0 %v1868_v22 }
  0x5e   :  { %1691 = vmatpush3.bf16.msra.mxu1 %v1892_v48 }
  0x5f   :  { %1692 = vmatprep.subr.bf16.mxu1 %v1894_v50 }
  0x60   :  { %1769 = vmatpush3.bf16.msra.mxu0 %v1868_v22 }
  0x61   :  { %1770 = vmatprep.subr.bf16.mxu0 %v1869_v24 }
  0x62   :  { %1693 = vmatpush3.bf16.msra.mxu1 %v1896_v52 }
  0x63   :  { %1694 = vmatprep.subr.bf16.mxu1 %v1898_v54 }
  0x64   :  { %1771 = vmatpush3.bf16.msra.mxu0 %v1869_v24 }
  0x65   :  { %1708 = vmatprep.subr.bf16.mxu0 %v1871_v27  ;;  %v1541_v27 = vld [vmem:[%s2180_s2] ss:$0 sm:$0xff] }
  0x66   :  { %1695 = vmatpush3.bf16.msra.mxu1 %v1900_v56 }
  0x67   :  { %1773 = vmatmul.mubr.bf16.vlgmr.msra.gmra.mrb[8].mxu0 %v174_v25  ;;  %1776 = vmatprep.subr.bf16.mxu1 %v2082_v58 }
  0x68   :  { %1709 = vmatpush3.bf16.msra.mxu0 %v1873_v29 }
  0x69   :  { %1710 = vmatprep.subr.bf16.mxu0 %v1875_v31 }
  0x6c   :  { %1711 = vmatpush3.bf16.msra.mxu0 %v1877_v33 }
  0x6d   :  { %1712 = vmatprep.subr.bf16.mxu0 %v1879_v35 }
  0x70   :  { %1713 = vmatpush3.bf16.msra.mxu0 %v1881_v37 }
  0x71   :  { %1714 = vmatprep.subr.bf16.mxu0 %v1883_v39 }
  0x74   :  { %1715 = vmatpush3.bf16.msra.mxu0 %v1885_v41 }
  0x75   :  { %1716 = vmatprep.subr.bf16.mxu0 %v1887_v43 }
  0x78   :  { %1717 = vmatpush3.bf16.msra.mxu0 %v1889_v45 }
  0x79   :  { %1718 = vmatprep.subr.bf16.mxu0 %v1891_v47 }
  0x7c   :  { %1719 = vmatpush3.bf16.msra.mxu0 %v1893_v49 }
  0x7d   :  { %1720 = vmatprep.subr.bf16.mxu0 %v1895_v51 }
  0x80   :  { %1721 = vmatpush3.bf16.msra.mxu0 %v1897_v53 }
  0x81   :  { %1722 = vmatprep.subr.bf16.mxu0 %v1899_v55 }
  0x84   :  { %1723 = vmatpush3.bf16.msra.mxu0 %v1901_v57 }
  0x85   :  { %1796 = vmatprep.subr.bf16.mxu0 %v2087_v60 }
 0x11a   :  { %v1630_v61 = vpop.f32.mrb[0].mxu0 }
 0x11b   :  { %v1631_v62 = vpop.f32.mrb[1].mxu0 }
 0x11c   :  { %v1632_v63 = vadd.f32 %v1631_v62, %v1630_v61  ;;  %v1633_v0 = vpop.f32.mrb[2].mxu0  ;;  %v1658_v3 = vpop.f32.mrb[0].mxu1 }
 0x11d   :  { %v1634_v1 = vpop.f32.mrb[3].mxu0  ;;  %v1659_v4 = vpop.f32.mrb[1].mxu1 }
 0x11e   :  { %v1635_v2 = vadd.f32 %v1634_v1, %v1633_v0  ;;  %v1660_v5 = vadd.f32 %v1659_v4, %v1658_v3  ;;  %v1661_v6 = vpop.f32.mrb[2].mxu1 }
 0x11f   :  { %v1662_v7 = vpop.f32.mrb[3].mxu1 }
 0x120   :  { %v1663_v8 = vadd.f32 %v1662_v7, %v1661_v6  ;;  %v580_v10 = vadd.f32 %v1660_v5, %v1632_v63 }
 0x122   :  { %v1636_v9 = vpop.f32.mrb[4].mxu0  ;;  %v583_v14 = vadd.f32 %v1663_v8, %v1635_v2 }
 0x123   :  { %v1637_v11 = vpop.f32.mrb[5].mxu0 }
 0x124   :  { %v1638_v12 = vadd.f32 %v1637_v11, %v1636_v9  ;;  %v1639_v13 = vpop.f32.mrb[6].mxu0  ;;  %v1664_v17 = vpop.f32.mrb[4].mxu1 }
 0x125   :  { %v1640_v15 = vpop.f32.mrb[7].mxu0  ;;  %v1665_v18 = vpop.f32.mrb[5].mxu1 }
 0x126   :  { %v1641_v16 = vadd.f32 %v1640_v15, %v1639_v13  ;;  %v1666_v19 = vadd.f32 %v1665_v18, %v1664_v17  ;;  %v1667_v20 = vpop.f32.mrb[6].mxu1 }
 0x127   :  { %v1668_v21 = vpop.f32.mrb[7].mxu1 }
 0x128   :  { %v1669_v22 = vadd.f32 %v1668_v21, %v1667_v20  ;;  %v588_v24 = vadd.f32 %v1666_v19, %v1638_v12 }
 0x12a   :  { %v591_v25 = vadd.f32 %v1669_v22, %v1641_v16 }
 0x13a   :  { %v1774_v26 = vpop.f32.mrb[8].mxu0 }
 0x13b   :  { %v637_v28 = vadd.f32 %v1774_v26, %v588_v24  ;;  %v628_v29 = vpop.f32.mrb[9].mxu0 }
 0x13c   :  { %v629_v31 = vadd.f32 %v628_v29, %v580_v10  ;;  %v1775_v32 = vpop.f32.mrb[10].mxu0 }
 0x13d   :  { %v650_v33 = vmul.f32 %v1541_v27, %v637_v28  ;;  %v640_v34 = vadd.f32 %v1775_v32, %v591_v25  ;;  %v631_v35 = vpop.f32.mrb[11].mxu0 }
 0x13e   :  { %v648_v36 = vmul.f32 %v1541_v27, %v629_v31  ;;  %v632_v37 = vadd.f32 %v631_v35, %v583_v14 }
 0x13f   :  { %v659_v38 = vadd.f32 %v1542_v30, %v650_v33  ;;  %v651_v39 = vmul.f32 %v1541_v27, %v640_v34 }
 0x140   :  { %v657_v40 = vadd.f32 %v1542_v30, %v648_v36  ;;  %v649_v41 = vmul.f32 %v1541_v27, %v632_v37 }
 0x141   :  { %v660_v42 = vadd.f32 %v1542_v30, %v651_v39  ;;  %v663_v44 = vmax.f32 %v659_v38, 0.0 }
 0x142   :  { %v658_v43 = vadd.f32 %v1542_v30, %v649_v41  ;;  %v661_v46 = vmax.f32 %v657_v40, 0.0 }
 0x143   :  { %v664_v45 = vmax.f32 %v660_v42, 0.0 }
 0x144   :  { %v662_v47 = vmax.f32 %v658_v43, 0.0 }
 0x145   :  { %v666_v48 = vpack.c.bf16 %v664_v45, %v663_v44  ;;  %v1904_v45 = vld [vmem:[#allocation5 + $0x108] sm:$0xff]  }
 0x146   :  { %v665_v49 = vpack.c.bf16 %v662_v47, %v661_v46 }
 0x147   :  { %v679_v50 = vrot.slane %v666_v48, 4 }
 0x148   :  { %v668_v51 = vrot.slane %v665_v49, 4 }
 0x149   :  { %v681_v52 = vsel %vm669_vm2, 0, %v679_v50  ;;  %v683_v53 = vsel %vm669_vm2, %v679_v50, 0  ;;  %v1905_v50 = vld [vmem:[%s2183_s5 + $0x8] sm:$0xff]  }
 0x14a   :  { %686 = vst [vmem:[#allocation2 + $0x10] sm:$0xff] %v681_v52  ;;  %687 = vst [vmem:[#allocation2 + $0x18] sm:$0xff] %v683_v53  ;;  %v672_v54 = vsel %vm669_vm2, 0, %v668_v51  ;;  %v674_v55 = vsel %vm669_vm2, %v668_v51, 0 }
 0x14b   :  { %676 = vst [vmem:[#allocation2] sm:$0xff] %v672_v54  ;;  %677 = vst [vmem:[#allocation2 + $0x8] sm:$0xff] %v674_v55 }
 0x151   :  { %v2101_v12 = vld [vmem:[#allocation2 + $0x10] sm:$0xf8]  ;;  %v2103_v17 = vld [vmem:[#allocation2 + $0x18] sm:$0xf] }
 0x152   :  { %v688_v56 = vld [vmem:[#allocation2] sm:$0xf8]  ;;  %v690_v57 = vld [vmem:[#allocation2 + $0x8] sm:$0xf]  ;;  %v745_v26 = vshrl.u32 %v2101_v12, 16  ;;  %v747_v29 = vshll.u32 %v2101_v12, 16 }
 0x153   :  { %v691_v61 = vld [vmem:[#allocation2] sm:$0xf0]  ;;  %v695_v62 = vshrl.u32 %v688_v56, 16  ;;  %v697_v63 = vshll.u32 %v688_v56, 16  ;;  %v702_v0 = vshll.u32 %v690_v57, 16  ;;  %v706_v1 = vshrl.u32 %v690_v57, 16 }
 0x154   :  { %v2097_v2 = vld [vmem:[#allocation2 + $0x8] sm:$0x1f]  ;;  %v716_v3 = vshrl.u32 %v691_v61, 16  ;;  %v719_v4 = vshll.u32 %v691_v61, 16  ;;  %v789_v10 = vrot.slane %v688_v56, 3  ;;  %v711_v21 = vrot.slane %v691_v61, 1 }
 0x155   :  { %v724_v5 = vshrl.u32 %v2097_v2, 16  ;;  %v727_v6 = vshll.u32 %v2097_v2, 16  ;;  %v689_v7 = vld [vmem:[#allocation2 + $0x8] sm:$0x7]  ;;  %v699_v8 = vrot.slane %v697_v63, 1  ;;  %v704_v9 = vrot.slane %v702_v0, 1 }
 0x156   :  { %v790_v11 = vrot.slane %v689_v7, 3  ;;  %v718_v13 = vrot.slane %v716_v3, 1  ;;  %v721_v14 = vrot.slane %v719_v4, 2  ;;  %v712_v25 = vrot.slane %v690_v57, 1  ;;  %v741_v31 = vld [vmem:[#allocation2 + $0x10] sm:$0xf0] }
 0x157   :  { %v726_v15 = vrot.slane %v724_v5, 1  ;;  %v729_v16 = vrot.slane %v727_v6, 2  ;;  %v700_v18 = vor.u32 %v699_v8, %v695_v62  ;;  %v708_v19 = vor.u32 %v706_v1, %v704_v9  ;;  %v2112_v40 = vld [vmem:[#allocation2 + $0x18] sm:$0x1f]  ;;  %v693_v62 = vld [vmem:[#allocation2] sm:$0xe0] }
 0x158   :  { %v791_v20 = vsel %vm788_vm3, %v789_v10, %v790_v11  ;;  %v722_v22 = vor.u32 %v721_v14, %v718_v13  ;;  %v752_v30 = vshll.u32 %v2103_v17, 16  ;;  %v713_v35 = vsel %vm111_vm1, %v711_v21, %v712_v25  ;;  %v739_v55 = vld [vmem:[#allocation2 + $0x18] sm:$0x7]  ;;  %v1906_v4 = vld [vmem:[#allocation5 + $0x110] sm:$0xff]  }
 0x159   :  { %v730_v24 = vor.u32 %v729_v16, %v726_v15  ;;  %v705_v27 = vsel %vm78_vm0, %v700_v18, %v704_v9  ;;  %v793_v28 = vrot.slane %v708_v19, 3  ;;  %v795_v37 = vrot.slane %v713_v35, 3  ;;  %v1916_v35 = vld [vmem:[#allocation5 + $0x138] sm:$0xff]  }
 0x15a   :  { %v792_v32 = vrot.slane %v705_v27, 3  ;;  %v796_v38 = vrot.slane %v712_v25, 3  ;;  %v749_v39 = vrot.slane %v747_v29, 1  ;;  %v754_v42 = vrot.slane %v752_v30, 1  ;;  %v1910_v27 = vld [vmem:[#allocation5 + $0x120] sm:$0xff]   ;;  %v1912_v29 = vld [vmem:[#allocation5 + $0x128] sm:$0xff]  }
 0x15b   :  { %v731_v33 = vsel %vm714_vm4, %v722_v22, %v730_v24  ;;  %v799_v34 = vrot.slane %v730_v24, 3  ;;  %v756_v43 = vshrl.u32 %v2103_v17, 16  ;;  %v765_v44 = vshrl.u32 %v741_v31, 16  ;;  %v1909_v22 = vld [vmem:[%s2183_s5 + $0x18] sm:$0xff]   ;;  %v1913_v30 = vld [vmem:[%s2183_s5 + $0x28] sm:$0xff]  }
 0x15c   :  { %v798_v36 = vrot.slane %v731_v33, 3  ;;  %v794_v41 = vsel %vm788_vm3, %v792_v32, %v793_v28  ;;  %v797_v47 = vsel %vm788_vm3, %v795_v37, %v796_v38  ;;  %v750_v48 = vor.u32 %v749_v39, %v745_v26  ;;  %v1911_v28 = vld [vmem:[%s2183_s5 + $0x20] sm:$0xff]   ;;  %v1914_v32 = vld [vmem:[#allocation5 + $0x130] sm:$0xff]  }
 0x15d   :  { %1183 = vmatprep.mubr.bf16.mxu1 %v794_v41  ;;  %v768_v49 = vshll.u32 %v741_v31, 16  ;;  %v758_v51 = vor.u32 %v756_v43, %v754_v42  ;;  %v767_v52 = vrot.slane %v765_v44, 1  ;;  %v773_v53 = vshrl.u32 %v2112_v40, 16  ;;  %v1915_v33 = vld [vmem:[%s2183_s5 + $0x30] sm:$0xff]  }
 0x15e   :  { %v800_v46 = vsel %vm788_vm3, %v798_v36, %v799_v34  ;;  %1184 = vmatmul.mubr.bf16.vlgmr.msra.gmra.mrb[8].mxu1 %v791_v20  ;;  %v776_v54 = vshll.u32 %v2112_v40, 16  ;;  %v755_v56 = vsel %vm78_vm0, %v750_v48, %v754_v42  ;;  %v811_v61 = vrot.slane %v2101_v12, 3  ;;  %v1917_v36 = vld [vmem:[%s2183_s5 + $0x38] sm:$0xff]  }
 0x15f   :  { %1232 = vmatprep.mubr.bf16.mxu0 %v800_v46  ;;  %1777 = vmatpush3.bf16.msra.mxu1 %v2082_v58  ;;  %v770_v57 = vrot.slane %v768_v49, 2  ;;  %v814_v63 = vrot.slane %v755_v56, 3  ;;  %v815_v0 = vrot.slane %v758_v51, 3  ;;  %v775_v1 = vrot.slane %v773_v53, 1  ;;  %v1907_v58 = vld [vmem:[%s2183_s5 + $0x10] sm:$0xff]  }
 0x160   :  { %1233 = vmatmul.mubr.bf16.vlgmr.msra.gmra.mrb[12].mxu0 %v797_v47  ;;  %v778_v3 = vrot.slane %v776_v54, 2  ;;  %1778 = vmatprep.subr.bf16.mxu1 %v1904_v45  ;;  %v812_v6 = vrot.slane %v739_v55, 3  ;;  %v761_v7 = vrot.slane %v741_v31, 1  ;;  %v762_v8 = vrot.slane %v2103_v17, 1  ;;  %v743_v31 = vld [vmem:[#allocation2 + $0x10] sm:$0xe0] }
 0x161   :  { %1797 = vmatpush3.bf16.msra.mxu0 %v2087_v60  ;;  %v771_v5 = vor.u32 %v770_v57, %v767_v52  ;;  %v816_v9 = vsel %vm788_vm3, %v814_v63, %v815_v0  ;;  %v735_v60 = vrot.slane %v693_v62, 2  ;;  %v736_v11 = vrot.slane %v2097_v2, 2  ;;  %v1908_v2 = vld [vmem:[#allocation5 + $0x118] sm:$0xff]  }
 0x162   :  { %1798 = vmatprep.subr.bf16.mxu0 %v1905_v50  ;;  %v779_v10 = vor.u32 %v778_v3, %v775_v1  ;;  %1191 = vmatprep.mubr.bf16.mxu1 %v816_v9  ;;  %v763_v12 = vsel %vm111_vm1, %v761_v7, %v762_v8  ;;  %v818_v13 = vrot.slane %v762_v8, 3  ;;  %v813_v19 = vsel %vm788_vm3, %v811_v61, %v812_v6  ;;  %v1593_v7 = vld [vmem:[%s2184_s6] ss:$0 sm:$0xff] }
 0x163   :  { %1779 = vmatpush3.bf16.msra.mxu1 %v1904_v45  ;;  %v817_v16 = vrot.slane %v763_v12, 3  ;;  %v737_v18 = vsel %vm734_vm5, %v735_v60, %v736_v11  ;;  %v802_v21 = vrot.slane %v736_v11, 3  ;;  %v783_v34 = vrot.slane %v743_v31, 2  ;;  %v1583_v9 = vld [vmem:[%s2182_s4] ss:$0 sm:$0xff] }
 0x164   :  { %v780_v14 = vsel %vm714_vm4, %v771_v5, %v779_v10  ;;  %v821_v15 = vrot.slane %v779_v10, 3  ;;  %1780 = vmatprep.subr.bf16.mxu1 %v1906_v4  ;;  %v801_v20 = vrot.slane %v737_v18, 3  ;;  %v1594_v11 = vld [vmem:[%s2184_s6 + $0x1] ss:$0 sm:$0xff] }
 0x165   :  { %1799 = vmatpush3.bf16.msra.mxu0 %v1905_v50  ;;  %v820_v17 = vrot.slane %v780_v14, 3  ;;  %v819_v25 = vsel %vm788_vm3, %v817_v16, %v818_v13  ;;  %v1584_v13 = vld [vmem:[%s2182_s4 + $0x1] ss:$0 sm:$0xff] }
 0x166   :  { %1800 = vmatprep.subr.bf16.mxu0 %v1907_v58  ;;  %1192 = vmatmul.mubr.bf16.gmra.mrb[12].mxu1 %v813_v19  ;;  %v803_v26 = vsel %vm788_vm3, %v801_v20, %v802_v21 }
 0x167   :  { %v822_v24 = vsel %vm788_vm3, %v820_v17, %v821_v15  ;;  %1781 = vmatpush3.bf16.msra.mxu1 %v1906_v4  ;;  %1792 = vmatprep.mubr.bf16.mxu1 %v803_v26 }
 0x168   :  { %1240 = vmatprep.mubr.bf16.mxu0 %v822_v24  ;;  %1782 = vmatprep.subr.bf16.mxu1 %v1908_v2 }
 0x169   :  { %1801 = vmatpush3.bf16.msra.mxu0 %v1907_v58 }
 0x16a   :  { %1241 = vmatmul.mubr.bf16.gmra.mrb[16].mxu0 %v819_v25  ;;  %1802 = vmatprep.subr.bf16.mxu0 %v1909_v22 }
 0x16b   :  { %1783 = vmatpush3.bf16.msra.mxu1 %v1908_v2  ;;  %1812 = vmatprep.mubr.bf16.mxu0 %v2057_v59  ;;  %v784_v59 = vrot.slane %v2112_v40, 2 }
 0x16c   :  { %1784 = vmatprep.subr.bf16.mxu1 %v1910_v27 }
 0x16d   :  { %1803 = vmatpush3.bf16.msra.mxu0 %v1909_v22  ;;  %v785_v37 = vsel %vm734_vm5, %v783_v34, %v784_v59  ;;  %v824_v39 = vrot.slane %v784_v59, 3 }
 0x16e   :  { %1804 = vmatprep.subr.bf16.mxu0 %v1911_v28  ;;  %v823_v38 = vrot.slane %v785_v37, 3 }
 0x16f   :  { %1785 = vmatpush3.bf16.msra.mxu1 %v1910_v27 }
 0x170   :  { %1786 = vmatprep.subr.bf16.mxu1 %v1912_v29  ;;  %v825_v40 = vsel %vm788_vm3, %v823_v38, %v824_v39 }
 0x171   :  { %1805 = vmatpush3.bf16.msra.mxu0 %v1911_v28 }
 0x172   :  { %1806 = vmatprep.subr.bf16.mxu0 %v1913_v30 }
 0x173   :  { %1787 = vmatpush3.bf16.msra.mxu1 %v1912_v29 }
 0x174   :  { %1788 = vmatprep.subr.bf16.mxu1 %v1914_v32 }
 0x175   :  { %1807 = vmatpush3.bf16.msra.mxu0 %v1913_v30 }
 0x176   :  { %1808 = vmatprep.subr.bf16.mxu0 %v1915_v33 }
 0x177   :  { %1789 = vmatpush3.bf16.msra.mxu1 %v1914_v32 }
 0x178   :  { %1790 = vmatprep.subr.bf16.mxu1 %v1916_v35 }
 0x179   :  { %1809 = vmatpush3.bf16.msra.mxu0 %v1915_v33 }
 0x17a   :  { %1810 = vmatprep.subr.bf16.mxu0 %v1917_v36 }
 0x17b   :  { %1791 = vmatpush3.bf16.msra.mxu1 %v1916_v35 }
 0x17d   :  { %1811 = vmatpush3.bf16.msra.mxu0 %v1917_v36 }
 0x17e   :  { %1793 = vmatmul.mubr.bf16.vlgmr.msra.gmra.mrb[16].mxu1 %v825_v40 }
 0x180   :  { %1813 = vmatmul.mubr.bf16.vlgmr.msra.gmra.mrb[20].mxu0 %v2078_v23 }
 0x231   :  { %v1696_v41 = vpop.f32.mrb[8].mxu1 }
 0x232   :  { %v1697_v43 = vpop.f32.mrb[9].mxu1 }
 0x233   :  { %v1724_v42 = vpop.f32.mrb[12].mxu0  ;;  %v1698_v44 = vadd.f32 %v1697_v43, %v1696_v41  ;;  %v1699_v46 = vpop.f32.mrb[10].mxu1 }
 0x234   :  { %v1725_v45 = vpop.f32.mrb[13].mxu0  ;;  %v1700_v49 = vpop.f32.mrb[11].mxu1 }
 0x235   :  { %v1726_v47 = vadd.f32 %v1725_v45, %v1724_v42  ;;  %v1727_v48 = vpop.f32.mrb[14].mxu0  ;;  %v1701_v50 = vadd.f32 %v1700_v49, %v1699_v46 }
 0x236   :  { %v1728_v51 = vpop.f32.mrb[15].mxu0 }
 0x237   :  { %v1729_v52 = vadd.f32 %v1728_v51, %v1727_v48  ;;  %v1235_v53 = vadd.f32 %v1726_v47, %v1698_v44 }
 0x239   :  { %v1238_v54 = vadd.f32 %v1729_v52, %v1701_v50  ;;  %v1702_v55 = vpop.f32.mrb[12].mxu1 }
 0x23a   :  { %v1703_v56 = vpop.f32.mrb[13].mxu1 }
 0x23b   :  { %v1704_v57 = vadd.f32 %v1703_v56, %v1702_v55  ;;  %v1705_v61 = vpop.f32.mrb[14].mxu1 }
 0x23c   :  { %v1706_v23 = vpop.f32.mrb[15].mxu1 }
 0x23d   :  { %v1730_v62 = vpop.f32.mrb[16].mxu0  ;;  %v1707_v0 = vadd.f32 %v1706_v23, %v1705_v61 }
 0x23e   :  { %v1731_v63 = vpop.f32.mrb[17].mxu0 }
 0x23f   :  { %v1732_v1 = vadd.f32 %v1731_v63, %v1730_v62  ;;  %v1733_v3 = vpop.f32.mrb[18].mxu0 }
 0x240   :  { %v1734_v4 = vpop.f32.mrb[19].mxu0 }
 0x241   :  { %v1735_v5 = vadd.f32 %v1734_v4, %v1733_v3  ;;  %v1243_v58 = vadd.f32 %v1732_v1, %v1704_v57 }
 0x243   :  { %v1246_v6 = vadd.f32 %v1735_v5, %v1707_v0 }
 0x251   :  { %v1794_v8 = vpop.f32.mrb[16].mxu1 }
 0x252   :  { %v1292_v10 = vadd.f32 %v1794_v8, %v1243_v58  ;;  %v1283_v12 = vpop.f32.mrb[17].mxu1 }
 0x253   :  { %v1814_v60 = vpop.f32.mrb[20].mxu0  ;;  %v1284_v15 = vadd.f32 %v1283_v12, %v1235_v53  ;;  %v1795_v18 = vpop.f32.mrb[18].mxu1 }
 0x254   :  { %v1436_v14 = vmul.f32 %v1814_v60, %v1593_v7  ;;  %v1414_v16 = vpop.f32.mrb[21].mxu0  ;;  %v1305_v17 = vmul.f32 %v1583_v9, %v1292_v10  ;;  %v1295_v20 = vadd.f32 %v1795_v18, %v1246_v6  ;;  %v1286_v2 = vpop.f32.mrb[19].mxu1 }
 0x255   :  { %v1434_v19 = vmul.f32 %v1593_v7, %v1414_v16  ;;  %v1815_v21 = vpop.f32.mrb[22].mxu0  ;;  %v1303_v24 = vmul.f32 %v1583_v9, %v1284_v15  ;;  %v1287_v26 = vadd.f32 %v1286_v2, %v1238_v54 }
 0x256   :  { %v1445_v22 = vadd.f32 %v1594_v11, %v1436_v14  ;;  %v1437_v25 = vmul.f32 %v1815_v21, %v1593_v7  ;;  %v1417_v27 = vpop.f32.mrb[23].mxu0  ;;  %v1314_v28 = vadd.f32 %v1584_v13, %v1305_v17  ;;  %v1306_v30 = vmul.f32 %v1583_v9, %v1295_v20 }
 0x257   :  { %v1443_v29 = vadd.f32 %v1594_v11, %v1434_v19  ;;  %v1435_v31 = vmul.f32 %v1593_v7, %v1417_v27  ;;  %v1312_v32 = vadd.f32 %v1584_v13, %v1303_v24  ;;  %v1304_v33 = vmul.f32 %v1583_v9, %v1287_v26 }
 0x258   :  { %v1449_v34 = vadd.f32 %v1445_v22, %v1314_v28  ;;  %v1315_v59 = vadd.f32 %v1584_v13, %v1306_v30  ;;  %v1446_v35 = vadd.f32 %v1594_v11, %v1437_v25 }
 0x259   :  { %v1447_v36 = vadd.f32 %v1443_v29, %v1312_v32  ;;  %v1313_v37 = vadd.f32 %v1584_v13, %v1304_v33  ;;  %v1444_v38 = vadd.f32 %v1594_v11, %v1435_v31 }
 0x25a   :  { %v1450_v39 = vadd.f32 %v1446_v35, %v1315_v59  ;;  %v1453_v41 = vmax.f32 %v1449_v34, 0.0 }
 0x25b   :  { %v1448_v40 = vadd.f32 %v1444_v38, %v1313_v37  ;;  %v1451_v43 = vmax.f32 %v1447_v36, 0.0 }
 0x25c   :  { %v1454_v42 = vmax.f32 %v1450_v39, 0.0 }
 0x25d   :  { %v1452_v44 = vmax.f32 %v1448_v40, 0.0 }
 0x25e   :  { %v1611_v45 = vpack.c.bf16 %v1454_v42, %v1453_v41 }
 0x25f   :  { %v1606_v46 = vpack.c.bf16 %v1452_v44, %v1451_v43 }
 0x260   :  { %1613 = vst [vmem:[%s2185_s7 + $0x8] sm:$0xff] %v1611_v45  }
 0x261   :  { %1607 = vst [vmem:[%s2185_s7] sm:$0xff] %v1606_v46  }
 0x262   :  { %1479 = vsyncpa [#allocation4], 1 }
 0x263   :  { %1480 = vsyncpa [#allocation6], 1 }

</bundles_post_ra>
